<compile_context>
chip_gen: v7x
topology: tpu7x:2x2x1
jax: 0.10.0
libtpu: 0.0.40
codegen_flags: <defaults>
</compile_context>

<pallas_src>
import math
from functools import partial

import jax
import jax.numpy as jnp
from jax.experimental import pallas as pl
from jax.experimental.pallas import tpu as pltpu


# Tile targets (safe on v7x's 64 MiB VMEM; raise on v5e/v6e if desired).
_TM, _TN = 256, 256          # matmul row / output tiles
_TQ, _TKV = 256, 512         # attention q-row tile / kv block
_VMEM_LIMIT = 32 * 1024 * 1024


def _pick_tile(dim, target, align):
    """Largest divisor of `dim` that is <= target and a multiple of `align`,
    else the full dim (full-dim blocks are always legal)."""
    if dim <= target:
        return dim
    t = (target // align) * align
    while t >= align:
        if dim % t == 0:
            return t
        t -= align
    return dim


# ---------------- Pallas kernels ----------------

def _linear_kernel(*refs, activation, fuse_residual, fuse_ln):
    """out = [residual +] act(LN?(x) @ w + b) on one (tm, tn) output tile, full K."""
    it = iter(refs)
    x_ref = next(it)
    g_ref = next(it) if fuse_ln else None
    bg_ref = next(it) if fuse_ln else None
    w_ref = next(it)
    b_ref = next(it)
    r_ref = next(it) if fuse_residual else None
    o_ref = next(it)

    x = x_ref[...].astype(jnp.float32)
    if fuse_ln:
        # LayerNorm fused in the prologue (full row is already in VMEM: tk == K).
        mu = jnp.mean(x, axis=-1, keepdims=True)
        var = jnp.mean(jnp.square(x - mu), axis=-1, keepdims=True)
        x = (x - mu) * jax.lax.rsqrt(var + 1e-5) * g_ref[...] + bg_ref[...]

    h = jnp.dot(x.astype(jnp.bfloat16), w_ref[...],
                preferred_element_type=jnp.float32)
    h = h + b_ref[...]
    if activation == "gelu":
        # GPT-2 "gelu_new" (tanh approximation)
        h = 0.5 * h * (1.0 + jnp.tanh(0.7978845608028654 *
                                      (h + 0.044715 * h * h * h)))
    if r_ref is not None:
        h = h + r_ref[...].astype(jnp.float32)
    o_ref[...] = h.astype(o_ref.dtype)


def _layernorm_kernel(x_ref, g_ref, b_ref, o_ref):
    x = x_ref[...].astype(jnp.float32)
    mu = jnp.mean(x, axis=-1, keepdims=True)
    var = jnp.mean(jnp.square(x - mu), axis=-1, keepdims=True)
    o_ref[...] = ((x - mu) * jax.lax.rsqrt(var + 1e-5)
                  * g_ref[...] + b_ref[...]).astype(o_ref.dtype)


def _attention_kernel(qkv_ref, mask_ref, o_ref, *, n_head, d_model, tq, tkv, scale):
    # qkv_ref: (T, 3D) slab for one batch row ([q | k | v] column blocks).
    # mask_ref: (1, 1, T) int32 key-padding mask. o_ref: (tq, D) lane-dense tile.
    T = qkv_ref.shape[0]
    hd = d_model // n_head
    n_kv = T // tkv
    qi = pl.program_id(1)
    q_start = pl.multiple_of(qi * tq, tq)

    # Global q positions for this q-row tile (causal part built per KV block).
    q_pos = qi * tq + jax.lax.broadcasted_iota(jnp.int32, (tq, tkv), 0)

    head_outs = []
    # TODO(synk): for production hd=64 heads, process two heads per iteration (or
    # relayout qkv head-major in the wrapper) so every q/k/v slice is 128-lane aligned.
    for h in range(n_head):
        q = (qkv_ref[pl.ds(q_start, tq), pl.ds(h * hd, hd)].astype(jnp.float32)
             * scale).astype(jnp.bfloat16)          # scale q, not the (tq,tkv) scores
        m = jnp.full((tq, 1), -1e30, jnp.float32)
        l = jnp.zeros((tq, 1), jnp.float32)
        acc = jnp.zeros((tq, hd), jnp.float32)
        # Online softmax over KV blocks: only a (tq, tkv) score tile is ever live.
        # TODO(synk): for very long T, stream KV blocks from HBM with
        # pltpu.make_async_copy double-buffering instead of holding (T, 3D) in VMEM.
        for kv in range(n_kv):
            k = qkv_ref[kv * tkv:(kv + 1) * tkv,
                        d_model + h * hd:d_model + (h + 1) * hd].astype(jnp.bfloat16)
            v = qkv_ref[kv * tkv:(kv + 1) * tkv,
                        2 * d_model + h * hd:2 * d_model + (h + 1) * hd].astype(jnp.bfloat16)
            s = jax.lax.dot_general(q, k, (((1,), (1,)), ((), ())),
                                    preferred_element_type=jnp.float32)
            k_pos = kv * tkv + jax.lax.broadcasted_iota(jnp.int32, (tq, tkv), 1)
            key_ok = mask_ref[0, :, kv * tkv:(kv + 1) * tkv] > 0     # (1, tkv) int32
            s = jnp.where((k_pos <= q_pos) & key_ok, s, -1e30)
            m_new = jnp.maximum(m, jnp.max(s, axis=-1, keepdims=True))
            alpha = jnp.exp(m - m_new)
            # NOTE: on v6e/v7x `jnp.exp((s - m_new).astype(jnp.bfloat16))` halves the
            # EUP cost; kept in f32 here for cross-generation numerical safety.
            p = jnp.exp(s - m_new)
            l = alpha * l + jnp.sum(p, axis=-1, keepdims=True)
            acc = alpha * acc + jnp.dot(p.astype(jnp.bfloat16), v,
                                        preferred_element_type=jnp.float32)
            m = m_new
        head_outs.append(acc * pl.reciprocal(l, approx=True))

    # ONE lane-dense full-width store (no per-head 64-lane masked partial stores).
    o_ref[...] = jnp.concatenate(head_outs, axis=-1).astype(o_ref.dtype)


# ---------------- Pallas wrappers ----------------

def pallas_linear(x, w, b, *, activation=None, residual=None, ln=None,
                  out_dtype=jnp.bfloat16):
    M, K = x.shape
    N = w.shape[1]
    tm = _pick_tile(M, _TM, 8)
    tn = _pick_tile(N, _TN, 128)
    grid = (M // tm, N // tn)
    # TODO(synk): add a split-K grid axis + f32 accumulator scratch for K >> 8192.

    inputs = [x.astype(jnp.bfloat16)]
    in_specs = [pl.BlockSpec((tm, K), lambda i, j: (i, 0))]
    if ln is not None:
        g, bg = ln
        inputs += [g.reshape(1, K).astype(jnp.float32),
                   bg.reshape(1, K).astype(jnp.float32)]
        in_specs += [pl.BlockSpec((1, K), lambda i, j: (0, 0)),
                     pl.BlockSpec((1, K), lambda i, j: (0, 0))]
    inputs += [w.astype(jnp.bfloat16), b.reshape(1, N).astype(jnp.float32)]
    in_specs += [pl.BlockSpec((K, tn), lambda i, j: (0, j)),
                 pl.BlockSpec((1, tn), lambda i, j: (0, j))]
    if residual is not None:
        inputs.append(residual.astype(jnp.bfloat16))
        in_specs.append(pl.BlockSpec((tm, tn), lambda i, j: (i, j)))

    return pl.pallas_call(
        partial(_linear_kernel, activation=activation,
                fuse_residual=residual is not None, fuse_ln=ln is not None),
        out_shape=jax.ShapeDtypeStruct((M, N), out_dtype),
        grid=grid,
        in_specs=in_specs,
        out_specs=pl.BlockSpec((tm, tn), lambda i, j: (i, j)),
        compiler_params=pltpu.CompilerParams(
            dimension_semantics=("parallel", "parallel"),
            vmem_limit_bytes=_VMEM_LIMIT),
    )(*inputs)


def pallas_layernorm(x, g, b, *, out_dtype=jnp.bfloat16):
    M, D = x.shape
    tm = _pick_tile(M, _TM, 8)
    return pl.pallas_call(
        _layernorm_kernel,
        out_shape=jax.ShapeDtypeStruct((M, D), out_dtype),
        grid=(M // tm,),
        in_specs=[pl.BlockSpec((tm, D), lambda i: (i, 0)),
                  pl.BlockSpec((1, D), lambda i: (0, 0)),
                  pl.BlockSpec((1, D), lambda i: (0, 0))],
        out_specs=pl.BlockSpec((tm, D), lambda i: (i, 0)),
        compiler_params=pltpu.CompilerParams(
            dimension_semantics=("parallel",),
            vmem_limit_bytes=_VMEM_LIMIT),
    )(x, g.reshape(1, D).astype(jnp.float32), b.reshape(1, D).astype(jnp.float32))


def pallas_attention(qkv, attn_mask, *, batch, seq, d_model, n_head):
    T = seq
    tq = _pick_tile(T, _TQ, 8)
    tkv = _pick_tile(T, _TKV, 8)
    n_q = T // tq
    mask3 = attn_mask.astype(jnp.int32).reshape(batch, 1, T)
    return pl.pallas_call(
        partial(_attention_kernel, n_head=n_head, d_model=d_model,
                tq=tq, tkv=tkv, scale=1.0 / math.sqrt(d_model // n_head)),
        out_shape=jax.ShapeDtypeStruct((batch * T, d_model), jnp.bfloat16),
        grid=(batch, n_q),
        in_specs=[pl.BlockSpec((T, 3 * d_model), lambda b, qi: (b, 0)),
                  pl.BlockSpec((1, 1, T), lambda b, qi: (b, 0, 0))],
        out_specs=pl.BlockSpec((tq, d_model), lambda b, qi: (b * n_q + qi, 0)),
        compiler_params=pltpu.CompilerParams(
            dimension_semantics=("parallel", "parallel"),
            vmem_limit_bytes=_VMEM_LIMIT),
    )(qkv, mask3)


# ---------------- Parameter init (deterministic, synthetic) ----------------

def init_params(key, vocab_size, n_pos, n_embd, n_layer, num_classes):
    def nrm(k, shape, dtype=jnp.float32):
        return (0.02 * jax.random.normal(k, shape, dtype=jnp.float32)).astype(dtype)

    keys = jax.random.split(key, 3 + n_layer)
    params = {
        "wte": nrm(keys[0], (vocab_size, n_embd)),
        "wpe": nrm(keys[1], (n_pos, n_embd)),
        "lnf_g": jnp.ones((n_embd,), jnp.float32),
        "lnf_b": jnp.zeros((n_embd,), jnp.float32),
        "w_dense": nrm(keys[2], (n_embd, num_classes)),
        "b_dense": jnp.zeros((num_classes,), jnp.float32),
        "blocks": [],
    }
    for l in range(n_layer):
        lk = jax.random.split(keys[3 + l], 4)
        params["blocks"].append(dict(
            ln1_g=jnp.ones((n_embd,), jnp.float32),
            ln1_b=jnp.zeros((n_embd,), jnp.float32),
            # matmul weights stored in bf16 (bf16-in / f32-accumulate on MXU)
            w_attn=nrm(lk[0], (n_embd, 3 * n_embd), jnp.bfloat16),
            b_attn=jnp.zeros((3 * n_embd,), jnp.float32),
            w_proj=nrm(lk[1], (n_embd, n_embd), jnp.bfloat16),
            b_proj=jnp.zeros((n_embd,), jnp.float32),
            ln2_g=jnp.ones((n_embd,), jnp.float32),
            ln2_b=jnp.zeros((n_embd,), jnp.float32),
            w_fc=nrm(lk[2], (n_embd, 4 * n_embd), jnp.bfloat16),
            b_fc=jnp.zeros((4 * n_embd,), jnp.float32),
            w_fc2=nrm(lk[3], (4 * n_embd, n_embd), jnp.bfloat16),
            b_fc2=jnp.zeros((n_embd,), jnp.float32),
        ))
    return params


# ---------------- Forward pass (GPT2Classifier semantics) ----------------

def gpt2_classifier_forward(params, input_ids, attention_mask, n_head):
    B, T = input_ids.shape
    D = params["wte"].shape[1]

    # token + position embeddings (gather glue stays in XLA)
    x = params["wte"][input_ids] + params["wpe"][:T][None, :, :]        # (B, T, D)
    x2d = x.reshape(B * T, D).astype(jnp.bfloat16)

    for blk in params["blocks"]:
        # attention sub-block: LN1 fused into the qkv projection prologue
        qkv = pallas_linear(x2d, blk["w_attn"], blk["b_attn"],
                            ln=(blk["ln1_g"], blk["ln1_b"]))            # (B*T, 3D)
        attn = pallas_attention(qkv, attention_mask, batch=B, seq=T,
                                d_model=D, n_head=n_head)               # (B*T, D)
        x2d = pallas_linear(attn, blk["w_proj"], blk["b_proj"],
                            residual=x2d)                               # fused residual
        # MLP sub-block: LN2 fused into the fc prologue
        h = pallas_linear(x2d, blk["w_fc"], blk["b_fc"],
                          activation="gelu", ln=(blk["ln2_g"], blk["ln2_b"]))
        x2d = pallas_linear(h, blk["w_fc2"], blk["b_fc2"], residual=x2d)

    # Pool BEFORE the final LayerNorm: LN is row-wise, so LN(pooled) == pool(LN(x));
    # matches the reference's literal last-position pooling while skipping a
    # full-sequence f32 HBM pass and LN over T-1 unused rows.
    pooled = x2d.reshape(B, T, D)[:, -1]                                # (B, D)
    pooled = pallas_layernorm(pooled, params["lnf_g"], params["lnf_b"],
                              out_dtype=jnp.float32)
    # Trivial (B, D) x (D, num_classes=2) head left to XLA (2-lane kernel output
    # would force fully-masked partial stores).
    logits = pooled @ params["w_dense"] + params["b_dense"]
    return logits


# ---------------- Main ----------------

if __name__ == "__main__":
    B, T = 2, 8                 # batch, sequence length
    n_embd, n_head, n_layer = 32, 2, 2
    vocab_size, n_pos, num_classes = 64, 16, 2

    key = jax.random.PRNGKey(0)
    kp, ki = jax.random.split(key)
    params = init_params(kp, vocab_size, n_pos, n_embd, n_layer, num_classes)

    input_ids = jax.random.randint(ki, (B, T), 0, vocab_size, dtype=jnp.int32)
    attention_mask = jnp.ones((B, T), dtype=jnp.int32).at[1, 6:].set(0)

    fwd = jax.jit(gpt2_classifier_forward, static_argnums=(3,))
    logits = fwd(params, input_ids, attention_mask, n_head)
    jax.block_until_ready(logits)
    assert logits.shape == (B, num_classes)
    assert logits.dtype == jnp.float32
    print("KERNEL_OK")
</pallas_src>

<mosaic_0001>
module attributes {stable_mosaic.version = 11 : i64} {
  func.func @_linear_kernel(%arg0: i32, %arg1: i32, %arg2: memref<16x32xbf16, #tpu.memory_space<vmem>>, %arg3: memref<1x32xf32, #tpu.memory_space<vmem>>, %arg4: memref<1x32xf32, #tpu.memory_space<vmem>>, %arg5: memref<32x128xbf16, #tpu.memory_space<vmem>>, %arg6: memref<1x128xf32, #tpu.memory_space<vmem>>, %arg7: memref<16x128xbf16, #tpu.memory_space<vmem>>) attributes {dimension_semantics = [#tpu.dimension_semantics<parallel>, #tpu.dimension_semantics<parallel>], iteration_bounds = array<i64: 1, 1>, scalar_prefetch = 0 : i64, scratch_operands = 0 : i64, tpu.core_type = #tpu.core_type<tc>, window_params = [{transform_indices = @transform_0, window_bounds = array<i64: 16, 32>}, {pipeline_mode = #tpu.pipeline_mode<synchronous>, transform_indices = @transform_1, window_bounds = array<i64: 1, 32>}, {pipeline_mode = #tpu.pipeline_mode<synchronous>, transform_indices = @transform_2, window_bounds = array<i64: 1, 32>}, {transform_indices = @transform_3, window_bounds = array<i64: 32, 128>}, {transform_indices = @transform_4, window_bounds = array<i64: 1, 128>}, {transform_indices = @transform_5, window_bounds = array<i64: 16, 128>}]} {
    %c0 = arith.constant 0 : index
    %c0_0 = arith.constant 0 : index
    %0 = vector.load %arg2[%c0, %c0_0] : memref<16x32xbf16, #tpu.memory_space<vmem>>, vector<16x32xbf16>
    %1 = arith.extf %0 : vector<16x32xbf16> to vector<16x32xf32>
    %cst = arith.constant dense<0.000000e+00> : vector<16xf32>
    %2 = vector.multi_reduction <add>, %1, %cst [1] : vector<16x32xf32> to vector<16xf32>
    %3 = vector.shape_cast %2 : vector<16xf32> to vector<16x1xf32>
    %cst_1 = arith.constant 3.200000e+01 : f32
    %4 = vector.broadcast %cst_1 : f32 to vector<16x1xf32>
    %5 = arith.divf %3, %4 : vector<16x1xf32>
    %6 = vector.broadcast %5 : vector<16x1xf32> to vector<16x32xf32>
    %7 = arith.subf %1, %6 : vector<16x32xf32>
    %8 = arith.mulf %7, %7 : vector<16x32xf32>
    %cst_2 = arith.constant dense<0.000000e+00> : vector<16xf32>
    %9 = vector.multi_reduction <add>, %8, %cst_2 [1] : vector<16x32xf32> to vector<16xf32>
    %10 = vector.shape_cast %9 : vector<16xf32> to vector<16x1xf32>
    %cst_3 = arith.constant 3.200000e+01 : f32
    %11 = vector.broadcast %cst_3 : f32 to vector<16x1xf32>
    %12 = arith.divf %10, %11 : vector<16x1xf32>
    %13 = vector.broadcast %5 : vector<16x1xf32> to vector<16x32xf32>
    %14 = arith.subf %1, %13 : vector<16x32xf32>
    %cst_4 = arith.constant 9.99999974E-6 : f32
    %15 = vector.broadcast %cst_4 : f32 to vector<16x1xf32>
    %16 = arith.addf %12, %15 : vector<16x1xf32>
    %17 = math.rsqrt %16 : vector<16x1xf32>
    %18 = vector.broadcast %17 : vector<16x1xf32> to vector<16x32xf32>
    %19 = arith.mulf %14, %18 : vector<16x32xf32>
    %c0_5 = arith.constant 0 : index
    %c0_6 = arith.constant 0 : index
    %20 = vector.load %arg3[%c0_5, %c0_6] : memref<1x32xf32, #tpu.memory_space<vmem>>, vector<1x32xf32>
    %21 = vector.broadcast %20 : vector<1x32xf32> to vector<16x32xf32>
    %22 = arith.mulf %19, %21 : vector<16x32xf32>
    %c0_7 = arith.constant 0 : index
    %c0_8 = arith.constant 0 : index
    %23 = vector.load %arg4[%c0_7, %c0_8] : memref<1x32xf32, #tpu.memory_space<vmem>>, vector<1x32xf32>
    %24 = vector.broadcast %23 : vector<1x32xf32> to vector<16x32xf32>
    %25 = arith.addf %22, %24 : vector<16x32xf32>
    %26 = arith.truncf %25 : vector<16x32xf32> to vector<16x32xbf16>
    %c0_9 = arith.constant 0 : index
    %c0_10 = arith.constant 0 : index
    %27 = vector.load %arg5[%c0_9, %c0_10] : memref<32x128xbf16, #tpu.memory_space<vmem>>, vector<32x128xbf16>
    %cst_11 = arith.constant dense<0.000000e+00> : vector<16x128xf32>
    %28 = tpu.matmul %26, %27, %cst_11 {dimension_numbers = #tpu.dot_dimension_numbers<[1], [0], [0], [1], [0, 0, 1, 1], [], []>} : vector<16x32xbf16>, vector<32x128xbf16>, vector<16x128xf32> -> vector<16x128xf32>
    %c0_12 = arith.constant 0 : index
    %c0_13 = arith.constant 0 : index
    %29 = vector.load %arg6[%c0_12, %c0_13] : memref<1x128xf32, #tpu.memory_space<vmem>>, vector<1x128xf32>
    %30 = vector.broadcast %29 : vector<1x128xf32> to vector<16x128xf32>
    %31 = arith.addf %28, %30 : vector<16x128xf32>
    %cst_14 = arith.constant 5.000000e-01 : f32
    %32 = vector.broadcast %cst_14 : f32 to vector<16x128xf32>
    %33 = arith.mulf %32, %31 : vector<16x128xf32>
    %cst_15 = arith.constant 4.471500e-02 : f32
    %34 = vector.broadcast %cst_15 : f32 to vector<16x128xf32>
    %35 = arith.mulf %34, %31 : vector<16x128xf32>
    %36 = arith.mulf %35, %31 : vector<16x128xf32>
    %37 = arith.mulf %36, %31 : vector<16x128xf32>
    %38 = arith.addf %31, %37 : vector<16x128xf32>
    %cst_16 = arith.constant 0.797884583 : f32
    %39 = vector.broadcast %cst_16 : f32 to vector<16x128xf32>
    %40 = arith.mulf %39, %38 : vector<16x128xf32>
    %41 = math.tanh %40 : vector<16x128xf32>
    %cst_17 = arith.constant 1.000000e+00 : f32
    %42 = vector.broadcast %cst_17 : f32 to vector<16x128xf32>
    %43 = arith.addf %42, %41 : vector<16x128xf32>
    %44 = arith.mulf %33, %43 : vector<16x128xf32>
    %45 = arith.truncf %44 : vector<16x128xf32> to vector<16x128xbf16>
    %c0_18 = arith.constant 0 : index
    %c0_19 = arith.constant 0 : index
    %46 = vector.load %arg7[%c0_18, %c0_19] : memref<16x128xbf16, #tpu.memory_space<vmem>>, vector<16x128xbf16>
    tpu.vector_store %arg7[%c0_18, %c0_19], %45 {strides = array<i32>} : memref<16x128xbf16, #tpu.memory_space<vmem>>, vector<16x128xbf16>,
    return
  }
  func.func @transform_0(%arg0: i32, %arg1: i32) -> (i32, i32) {
    %c0_i32 = arith.constant 0 : i32
    %c0_i32_0 = arith.constant 0 : i32
    return %arg0, %c0_i32 : i32, i32
  }
  func.func @transform_1(%arg0: i32, %arg1: i32) -> (i32, i32) {
    %c0_i32 = arith.constant 0 : i32
    %c0_i32_0 = arith.constant 0 : i32
    %c0_i32_1 = arith.constant 0 : i32
    return %c0_i32, %c0_i32_0 : i32, i32
  }
  func.func @transform_2(%arg0: i32, %arg1: i32) -> (i32, i32) {
    %c0_i32 = arith.constant 0 : i32
    %c0_i32_0 = arith.constant 0 : i32
    %c0_i32_1 = arith.constant 0 : i32
    return %c0_i32, %c0_i32_0 : i32, i32
  }
  func.func @transform_3(%arg0: i32, %arg1: i32) -> (i32, i32) {
    %c0_i32 = arith.constant 0 : i32
    %c0_i32_0 = arith.constant 0 : i32
    return %c0_i32, %arg1 : i32, i32
  }
  func.func @transform_4(%arg0: i32, %arg1: i32) -> (i32, i32) {
    %c0_i32 = arith.constant 0 : i32
    %c0_i32_0 = arith.constant 0 : i32
    return %c0_i32, %arg1 : i32, i32
  }
  func.func @transform_5(%arg0: i32, %arg1: i32) -> (i32, i32) {
    %c0_i32 = arith.constant 0 : i32
    return %arg0, %arg1 : i32, i32
  }
}

module attributes {stable_mosaic.version = 11 : i64} {
  func.func @_linear_kernel(%arg0: i32, %arg1: i32, %arg2: memref<16x32xbf16, #tpu.memory_space<vmem>>, %arg3: memref<1x32xf32, #tpu.memory_space<vmem>>, %arg4: memref<1x32xf32, #tpu.memory_space<vmem>>, %arg5: memref<32x96xbf16, #tpu.memory_space<vmem>>, %arg6: memref<1x96xf32, #tpu.memory_space<vmem>>, %arg7: memref<16x96xbf16, #tpu.memory_space<vmem>>) attributes {dimension_semantics = [#tpu.dimension_semantics<parallel>, #tpu.dimension_semantics<parallel>], iteration_bounds = array<i64: 1, 1>, scalar_prefetch = 0 : i64, scratch_operands = 0 : i64, tpu.core_type = #tpu.core_type<tc>, window_params = [{transform_indices = @transform_0, window_bounds = array<i64: 16, 32>}, {pipeline_mode = #tpu.pipeline_mode<synchronous>, transform_indices = @transform_1, window_bounds = array<i64: 1, 32>}, {pipeline_mode = #tpu.pipeline_mode<synchronous>, transform_indices = @transform_2, window_bounds = array<i64: 1, 32>}, {transform_indices = @transform_3, window_bounds = array<i64: 32, 96>}, {transform_indices = @transform_4, window_bounds = array<i64: 1, 96>}, {transform_indices = @transform_5, window_bounds = array<i64: 16, 96>}]} {
    %c0 = arith.constant 0 : index
    %c0_0 = arith.constant 0 : index
    %0 = vector.load %arg2[%c0, %c0_0] : memref<16x32xbf16, #tpu.memory_space<vmem>>, vector<16x32xbf16>
    %1 = arith.extf %0 : vector<16x32xbf16> to vector<16x32xf32>
    %cst = arith.constant dense<0.000000e+00> : vector<16xf32>
    %2 = vector.multi_reduction <add>, %1, %cst [1] : vector<16x32xf32> to vector<16xf32>
    %3 = vector.shape_cast %2 : vector<16xf32> to vector<16x1xf32>
    %cst_1 = arith.constant 3.200000e+01 : f32
    %4 = vector.broadcast %cst_1 : f32 to vector<16x1xf32>
    %5 = arith.divf %3, %4 : vector<16x1xf32>
    %6 = vector.broadcast %5 : vector<16x1xf32> to vector<16x32xf32>
    %7 = arith.subf %1, %6 : vector<16x32xf32>
    %8 = arith.mulf %7, %7 : vector<16x32xf32>
    %cst_2 = arith.constant dense<0.000000e+00> : vector<16xf32>
    %9 = vector.multi_reduction <add>, %8, %cst_2 [1] : vector<16x32xf32> to vector<16xf32>
    %10 = vector.shape_cast %9 : vector<16xf32> to vector<16x1xf32>
    %cst_3 = arith.constant 3.200000e+01 : f32
    %11 = vector.broadcast %cst_3 : f32 to vector<16x1xf32>
    %12 = arith.divf %10, %11 : vector<16x1xf32>
    %13 = vector.broadcast %5 : vector<16x1xf32> to vector<16x32xf32>
    %14 = arith.subf %1, %13 : vector<16x32xf32>
    %cst_4 = arith.constant 9.99999974E-6 : f32
    %15 = vector.broadcast %cst_4 : f32 to vector<16x1xf32>
    %16 = arith.addf %12, %15 : vector<16x1xf32>
    %17 = math.rsqrt %16 : vector<16x1xf32>
    %18 = vector.broadcast %17 : vector<16x1xf32> to vector<16x32xf32>
    %19 = arith.mulf %14, %18 : vector<16x32xf32>
    %c0_5 = arith.constant 0 : index
    %c0_6 = arith.constant 0 : index
    %20 = vector.load %arg3[%c0_5, %c0_6] : memref<1x32xf32, #tpu.memory_space<vmem>>, vector<1x32xf32>
    %21 = vector.broadcast %20 : vector<1x32xf32> to vector<16x32xf32>
    %22 = arith.mulf %19, %21 : vector<16x32xf32>
    %c0_7 = arith.constant 0 : index
    %c0_8 = arith.constant 0 : index
    %23 = vector.load %arg4[%c0_7, %c0_8] : memref<1x32xf32, #tpu.memory_space<vmem>>, vector<1x32xf32>
    %24 = vector.broadcast %23 : vector<1x32xf32> to vector<16x32xf32>
    %25 = arith.addf %22, %24 : vector<16x32xf32>
    %26 = arith.truncf %25 : vector<16x32xf32> to vector<16x32xbf16>
    %c0_9 = arith.constant 0 : index
    %c0_10 = arith.constant 0 : index
    %27 = vector.load %arg5[%c0_9, %c0_10] : memref<32x96xbf16, #tpu.memory_space<vmem>>, vector<32x96xbf16>
    %cst_11 = arith.constant dense<0.000000e+00> : vector<16x96xf32>
    %28 = tpu.matmul %26, %27, %cst_11 {dimension_numbers = #tpu.dot_dimension_numbers<[1], [0], [0], [1], [0, 0, 1, 1], [], []>} : vector<16x32xbf16>, vector<32x96xbf16>, vector<16x96xf32> -> vector<16x96xf32>
    %c0_12 = arith.constant 0 : index
    %c0_13 = arith.constant 0 : index
    %29 = vector.load %arg6[%c0_12, %c0_13] : memref<1x96xf32, #tpu.memory_space<vmem>>, vector<1x96xf32>
    %30 = vector.broadcast %29 : vector<1x96xf32> to vector<16x96xf32>
    %31 = arith.addf %28, %30 : vector<16x96xf32>
    %32 = arith.truncf %31 : vector<16x96xf32> to vector<16x96xbf16>
    %c0_14 = arith.constant 0 : index
    %c0_15 = arith.constant 0 : index
    %33 = vector.load %arg7[%c0_14, %c0_15] : memref<16x96xbf16, #tpu.memory_space<vmem>>, vector<16x96xbf16>
    tpu.vector_store %arg7[%c0_14, %c0_15], %32 {strides = array<i32>} : memref<16x96xbf16, #tpu.memory_space<vmem>>, vector<16x96xbf16>,
    return
  }
  func.func @transform_0(%arg0: i32, %arg1: i32) -> (i32, i32) {
    %c0_i32 = arith.constant 0 : i32
    %c0_i32_0 = arith.constant 0 : i32
    return %arg0, %c0_i32 : i32, i32
  }
  func.func @transform_1(%arg0: i32, %arg1: i32) -> (i32, i32) {
    %c0_i32 = arith.constant 0 : i32
    %c0_i32_0 = arith.constant 0 : i32
    %c0_i32_1 = arith.constant 0 : i32
    return %c0_i32, %c0_i32_0 : i32, i32
  }
  func.func @transform_2(%arg0: i32, %arg1: i32) -> (i32, i32) {
    %c0_i32 = arith.constant 0 : i32
    %c0_i32_0 = arith.constant 0 : i32
    %c0_i32_1 = arith.constant 0 : i32
    return %c0_i32, %c0_i32_0 : i32, i32
  }
  func.func @transform_3(%arg0: i32, %arg1: i32) -> (i32, i32) {
    %c0_i32 = arith.constant 0 : i32
    %c0_i32_0 = arith.constant 0 : i32
    return %c0_i32, %arg1 : i32, i32
  }
  func.func @transform_4(%arg0: i32, %arg1: i32) -> (i32, i32) {
    %c0_i32 = arith.constant 0 : i32
    %c0_i32_0 = arith.constant 0 : i32
    return %c0_i32, %arg1 : i32, i32
  }
  func.func @transform_5(%arg0: i32, %arg1: i32) -> (i32, i32) {
    %c0_i32 = arith.constant 0 : i32
    return %arg0, %arg1 : i32, i32
  }
}

module attributes {stable_mosaic.version = 11 : i64} {
  func.func @_attention_kernel(%arg0: i32, %arg1: i32, %arg2: memref<8x96xbf16, #tpu.memory_space<vmem>>, %arg3: memref<1x1x8xi32, #tpu.memory_space<vmem>>, %arg4: memref<8x32xbf16, #tpu.memory_space<vmem>>) attributes {dimension_semantics = [#tpu.dimension_semantics<parallel>, #tpu.dimension_semantics<parallel>], iteration_bounds = array<i64: 2, 1>, scalar_prefetch = 0 : i64, scratch_operands = 0 : i64, tpu.core_type = #tpu.core_type<tc>, window_params = [{transform_indices = @transform_0, window_bounds = array<i64: 8, 96>}, {transform_indices = @transform_1, window_bounds = array<i64: 1, 1, 8>}, {transform_indices = @transform_2, window_bounds = array<i64: 8, 32>}]} {
    %c8_i32 = arith.constant 8 : i32
    %0 = arith.muli %arg1, %c8_i32 : i32
    %1 = tpu.assume_multiple %0, 8 : i32
    %c8_i32_0 = arith.constant 8 : i32
    %2 = arith.muli %arg1, %c8_i32_0 : i32
    %3 = tpu.iota {dimensions = array<i32: 0>} : vector<8x8xi32>
    %4 = vector.broadcast %2 : i32 to vector<8x8xi32>
    %5 = arith.addi %4, %3 : vector<8x8xi32>
    %6 = arith.index_cast %1 : i32 to index
    %c0 = arith.constant 0 : index
    %7 = vector.load %arg2[%6, %c0] : memref<8x96xbf16, #tpu.memory_space<vmem>>, vector<8x16xbf16>
    %8 = arith.extf %7 : vector<8x16xbf16> to vector<8x16xf32>
    %cst = arith.constant 2.500000e-01 : f32
    %9 = vector.broadcast %cst : f32 to vector<8x16xf32>
    %10 = arith.mulf %8, %9 : vector<8x16xf32>
    %11 = arith.truncf %10 : vector<8x16xf32> to vector<8x16xbf16>
    %cst_1 = arith.constant -1.000000e+30 : f32
    %12 = vector.broadcast %cst_1 : f32 to vector<8x1xf32>
    %cst_2 = arith.constant 0.000000e+00 : f32
    %13 = vector.broadcast %cst_2 : f32 to vector<8x1xf32>
    %cst_3 = arith.constant 0.000000e+00 : f32
    %14 = vector.broadcast %cst_3 : f32 to vector<8x16xf32>
    %c0_4 = arith.constant 0 : index
    %c32 = arith.constant 32 : index
    %15 = vector.load %arg2[%c0_4, %c32] : memref<8x96xbf16, #tpu.memory_space<vmem>>, vector<8x16xbf16>
    %c0_5 = arith.constant 0 : index
    %c64 = arith.constant 64 : index
    %16 = vector.load %arg2[%c0_5, %c64] : memref<8x96xbf16, #tpu.memory_space<vmem>>, vector<8x16xbf16>
    %cst_6 = arith.constant dense<0.000000e+00> : vector<8x8xf32>
    %17 = tpu.matmul %11, %15, %cst_6 {dimension_numbers = #tpu.dot_dimension_numbers<[1], [1], [0], [0], [0, 0, 1, 0], [], []>} : vector<8x16xbf16>, vector<8x16xbf16>, vector<8x8xf32> -> vector<8x8xf32>
    %18 = tpu.iota {dimensions = array<i32: 1>} : vector<8x8xi32>
    %c0_i32 = arith.constant 0 : i32
    %19 = vector.broadcast %c0_i32 : i32 to vector<8x8xi32>
    %20 = arith.addi %19, %18 : vector<8x8xi32>
    %c0_7 = arith.constant 0 : index
    %c0_8 = arith.constant 0 : index
    %c0_9 = arith.constant 0 : index
    %21 = vector.load %arg3[%c0_7, %c0_8, %c0_9] : memref<1x1x8xi32, #tpu.memory_space<vmem>>, vector<1x1x8xi32>
    %22 = vector.shape_cast %21 : vector<1x1x8xi32> to vector<1x8xi32>
    %c0_i32_10 = arith.constant 0 : i32
    %23 = vector.broadcast %c0_i32_10 : i32 to vector<1x8xi32>
    %24 = arith.cmpi sgt, %22, %23 : vector<1x8xi32>
    %25 = arith.cmpi sle, %20, %5 : vector<8x8xi32>
    %26 = vector.broadcast %24 : vector<1x8xi1> to vector<8x8xi1>
    %27 = arith.andi %25, %26 : vector<8x8xi1>
    %cst_11 = arith.constant -1.000000e+30 : f32
    %28 = vector.broadcast %cst_11 : f32 to vector<8x8xf32>
    %29 = arith.select %27, %17, %28 : vector<8x8xi1>, vector<8x8xf32>
    %cst_12 = arith.constant dense<0xFF800000> : vector<8xf32>
    %30 = vector.multi_reduction <maximumf>, %29, %cst_12 [1] : vector<8x8xf32> to vector<8xf32>
    %31 = vector.shape_cast %30 : vector<8xf32> to vector<8x1xf32>
    %32 = arith.maximumf %12, %31 : vector<8x1xf32>
    %33 = arith.subf %12, %32 : vector<8x1xf32>
    %34 = math.exp %33 : vector<8x1xf32>
    %35 = vector.broadcast %32 : vector<8x1xf32> to vector<8x8xf32>
    %36 = arith.subf %29, %35 : vector<8x8xf32>
    %37 = math.exp %36 : vector<8x8xf32>
    %38 = arith.mulf %34, %13 : vector<8x1xf32>
    %cst_13 = arith.constant dense<0.000000e+00> : vector<8xf32>
    %39 = vector.multi_reduction <add>, %37, %cst_13 [1] : vector<8x8xf32> to vector<8xf32>
    %40 = vector.shape_cast %39 : vector<8xf32> to vector<8x1xf32>
    %41 = arith.addf %38, %40 : vector<8x1xf32>
    %42 = vector.broadcast %34 : vector<8x1xf32> to vector<8x16xf32>
    %43 = arith.mulf %42, %14 : vector<8x16xf32>
    %44 = arith.truncf %37 : vector<8x8xf32> to vector<8x8xbf16>
    %cst_14 = arith.constant dense<0.000000e+00> : vector<8x16xf32>
    %45 = tpu.matmul %44, %16, %cst_14 {dimension_numbers = #tpu.dot_dimension_numbers<[1], [0], [0], [1], [0, 0, 1, 1], [], []>} : vector<8x8xbf16>, vector<8x16xbf16>, vector<8x16xf32> -> vector<8x16xf32>
    %46 = arith.addf %43, %45 : vector<8x16xf32>
    %47 = tpu.reciprocal %41 {approx = true} : vector<8x1xf32> -> vector<8x1xf32>
    %48 = vector.broadcast %47 : vector<8x1xf32> to vector<8x16xf32>
    %49 = arith.mulf %46, %48 : vector<8x16xf32>
    %50 = arith.index_cast %1 : i32 to index
    %c16 = arith.constant 16 : index
    %51 = vector.load %arg2[%50, %c16] : memref<8x96xbf16, #tpu.memory_space<vmem>>, vector<8x16xbf16>
    %52 = arith.extf %51 : vector<8x16xbf16> to vector<8x16xf32>
    %cst_15 = arith.constant 2.500000e-01 : f32
    %53 = vector.broadcast %cst_15 : f32 to vector<8x16xf32>
    %54 = arith.mulf %52, %53 : vector<8x16xf32>
    %55 = arith.truncf %54 : vector<8x16xf32> to vector<8x16xbf16>
    %cst_16 = arith.constant -1.000000e+30 : f32
    %56 = vector.broadcast %cst_16 : f32 to vector<8x1xf32>
    %cst_17 = arith.constant 0.000000e+00 : f32
    %57 = vector.broadcast %cst_17 : f32 to vector<8x1xf32>
    %cst_18 = arith.constant 0.000000e+00 : f32
    %58 = vector.broadcast %cst_18 : f32 to vector<8x16xf32>
    %c0_19 = arith.constant 0 : index
    %c48 = arith.constant 48 : index
    %59 = vector.load %arg2[%c0_19, %c48] : memref<8x96xbf16, #tpu.memory_space<vmem>>, vector<8x16xbf16>
    %c0_20 = arith.constant 0 : index
    %c80 = arith.constant 80 : index
    %60 = vector.load %arg2[%c0_20, %c80] : memref<8x96xbf16, #tpu.memory_space<vmem>>, vector<8x16xbf16>
    %cst_21 = arith.constant dense<0.000000e+00> : vector<8x8xf32>
    %61 = tpu.matmul %55, %59, %cst_21 {dimension_numbers = #tpu.dot_dimension_numbers<[1], [1], [0], [0], [0, 0, 1, 0], [], []>} : vector<8x16xbf16>, vector<8x16xbf16>, vector<8x8xf32> -> vector<8x8xf32>
    %62 = tpu.iota {dimensions = array<i32: 1>} : vector<8x8xi32>
    %c0_i32_22 = arith.constant 0 : i32
    %63 = vector.broadcast %c0_i32_22 : i32 to vector<8x8xi32>
    %64 = arith.addi %63, %62 : vector<8x8xi32>
    %c0_23 = arith.constant 0 : index
    %c0_24 = arith.constant 0 : index
    %c0_25 = arith.constant 0 : index
    %65 = vector.load %arg3[%c0_23, %c0_24, %c0_25] : memref<1x1x8xi32, #tpu.memory_space<vmem>>, vector<1x1x8xi32>
    %66 = vector.shape_cast %65 : vector<1x1x8xi32> to vector<1x8xi32>
    %c0_i32_26 = arith.constant 0 : i32
    %67 = vector.broadcast %c0_i32_26 : i32 to vector<1x8xi32>
    %68 = arith.cmpi sgt, %66, %67 : vector<1x8xi32>
    %69 = arith.cmpi sle, %64, %5 : vector<8x8xi32>
    %70 = vector.broadcast %68 : vector<1x8xi1> to vector<8x8xi1>
    %71 = arith.andi %69, %70 : vector<8x8xi1>
    %cst_27 = arith.constant -1.000000e+30 : f32
    %72 = vector.broadcast %cst_27 : f32 to vector<8x8xf32>
    %73 = arith.select %71, %61, %72 : vector<8x8xi1>, vector<8x8xf32>
    %cst_28 = arith.constant dense<0xFF800000> : vector<8xf32>
    %74 = vector.multi_reduction <maximumf>, %73, %cst_28 [1] : vector<8x8xf32> to vector<8xf32>
    %75 = vector.shape_cast %74 : vector<8xf32> to vector<8x1xf32>
    %76 = arith.maximumf %56, %75 : vector<8x1xf32>
    %77 = arith.subf %56, %76 : vector<8x1xf32>
    %78 = math.exp %77 : vector<8x1xf32>
    %79 = vector.broadcast %76 : vector<8x1xf32> to vector<8x8xf32>
    %80 = arith.subf %73, %79 : vector<8x8xf32>
    %81 = math.exp %80 : vector<8x8xf32>
    %82 = arith.mulf %78, %57 : vector<8x1xf32>
    %cst_29 = arith.constant dense<0.000000e+00> : vector<8xf32>
    %83 = vector.multi_reduction <add>, %81, %cst_29 [1] : vector<8x8xf32> to vector<8xf32>
    %84 = vector.shape_cast %83 : vector<8xf32> to vector<8x1xf32>
    %85 = arith.addf %82, %84 : vector<8x1xf32>
    %86 = vector.broadcast %78 : vector<8x1xf32> to vector<8x16xf32>
    %87 = arith.mulf %86, %58 : vector<8x16xf32>
    %88 = arith.truncf %81 : vector<8x8xf32> to vector<8x8xbf16>
    %cst_30 = arith.constant dense<0.000000e+00> : vector<8x16xf32>
    %89 = tpu.matmul %88, %60, %cst_30 {dimension_numbers = #tpu.dot_dimension_numbers<[1], [0], [0], [1], [0, 0, 1, 1], [], []>} : vector<8x8xbf16>, vector<8x16xbf16>, vector<8x16xf32> -> vector<8x16xf32>
    %90 = arith.addf %87, %89 : vector<8x16xf32>
    %91 = tpu.reciprocal %85 {approx = true} : vector<8x1xf32> -> vector<8x1xf32>
    %92 = vector.broadcast %91 : vector<8x1xf32> to vector<8x16xf32>
    %93 = arith.mulf %90, %92 : vector<8x16xf32>
    %94 = tpu.concatenate %49, %93 in 1 : vector<8x16xf32>, vector<8x16xf32> -> vector<8x32xf32>
    %95 = arith.truncf %94 : vector<8x32xf32> to vector<8x32xbf16>
    %c0_31 = arith.constant 0 : index
    %c0_32 = arith.constant 0 : index
    %96 = vector.load %arg4[%c0_31, %c0_32] : memref<8x32xbf16, #tpu.memory_space<vmem>>, vector<8x32xbf16>
    tpu.vector_store %arg4[%c0_31, %c0_32], %95 {strides = array<i32>} : memref<8x32xbf16, #tpu.memory_space<vmem>>, vector<8x32xbf16>,
    return
  }
  func.func @transform_0(%arg0: i32, %arg1: i32) -> (i32, i32) {
    %c0_i32 = arith.constant 0 : i32
    %c0_i32_0 = arith.constant 0 : i32
    return %arg0, %c0_i32 : i32, i32
  }
  func.func @transform_1(%arg0: i32, %arg1: i32) -> (i32, i32, i32) {
    %c0_i32 = arith.constant 0 : i32
    %c0_i32_0 = arith.constant 0 : i32
    %c0_i32_1 = arith.constant 0 : i32
    return %arg0, %c0_i32, %c0_i32_0 : i32, i32, i32
  }
  func.func @transform_2(%arg0: i32, %arg1: i32) -> (i32, i32) {
    %c1_i32 = arith.constant 1 : i32
    %0 = arith.muli %arg0, %c1_i32 : i32
    %1 = arith.addi %0, %arg1 : i32
    %c0_i32 = arith.constant 0 : i32
    %c0_i32_0 = arith.constant 0 : i32
    return %1, %c0_i32 : i32, i32
  }
}

module attributes {stable_mosaic.version = 11 : i64} {
  func.func @_linear_kernel(%arg0: i32, %arg1: i32, %arg2: memref<16x32xbf16, #tpu.memory_space<vmem>>, %arg3: memref<32x32xbf16, #tpu.memory_space<vmem>>, %arg4: memref<1x32xf32, #tpu.memory_space<vmem>>, %arg5: memref<16x32xbf16, #tpu.memory_space<vmem>>, %arg6: memref<16x32xbf16, #tpu.memory_space<vmem>>) attributes {dimension_semantics = [#tpu.dimension_semantics<parallel>, #tpu.dimension_semantics<parallel>], iteration_bounds = array<i64: 1, 1>, scalar_prefetch = 0 : i64, scratch_operands = 0 : i64, tpu.core_type = #tpu.core_type<tc>, window_params = [{transform_indices = @transform_0, window_bounds = array<i64: 16, 32>}, {transform_indices = @transform_1, window_bounds = array<i64: 32, 32>}, {transform_indices = @transform_2, window_bounds = array<i64: 1, 32>}, {transform_indices = @transform_3, window_bounds = array<i64: 16, 32>}, {transform_indices = @transform_4, window_bounds = array<i64: 16, 32>}]} {
    %c0 = arith.constant 0 : index
    %c0_0 = arith.constant 0 : index
    %0 = vector.load %arg2[%c0, %c0_0] : memref<16x32xbf16, #tpu.memory_space<vmem>>, vector<16x32xbf16>
    %1 = arith.extf %0 : vector<16x32xbf16> to vector<16x32xf32>
    %2 = arith.truncf %1 : vector<16x32xf32> to vector<16x32xbf16>
    %c0_1 = arith.constant 0 : index
    %c0_2 = arith.constant 0 : index
    %3 = vector.load %arg3[%c0_1, %c0_2] : memref<32x32xbf16, #tpu.memory_space<vmem>>, vector<32x32xbf16>
    %cst = arith.constant dense<0.000000e+00> : vector<16x32xf32>
    %4 = tpu.matmul %2, %3, %cst {dimension_numbers = #tpu.dot_dimension_numbers<[1], [0], [0], [1], [0, 0, 1, 1], [], []>} : vector<16x32xbf16>, vector<32x32xbf16>, vector<16x32xf32> -> vector<16x32xf32>
    %c0_3 = arith.constant 0 : index
    %c0_4 = arith.constant 0 : index
    %5 = vector.load %arg4[%c0_3, %c0_4] : memref<1x32xf32, #tpu.memory_space<vmem>>, vector<1x32xf32>
    %6 = vector.broadcast %5 : vector<1x32xf32> to vector<16x32xf32>
    %7 = arith.addf %4, %6 : vector<16x32xf32>
    %c0_5 = arith.constant 0 : index
    %c0_6 = arith.constant 0 : index
    %8 = vector.load %arg5[%c0_5, %c0_6] : memref<16x32xbf16, #tpu.memory_space<vmem>>, vector<16x32xbf16>
    %9 = arith.extf %8 : vector<16x32xbf16> to vector<16x32xf32>
    %10 = arith.addf %7, %9 : vector<16x32xf32>
    %11 = arith.truncf %10 : vector<16x32xf32> to vector<16x32xbf16>
    %c0_7 = arith.constant 0 : index
    %c0_8 = arith.constant 0 : index
    %12 = vector.load %arg6[%c0_7, %c0_8] : memref<16x32xbf16, #tpu.memory_space<vmem>>, vector<16x32xbf16>
    tpu.vector_store %arg6[%c0_7, %c0_8], %11 {strides = array<i32>} : memref<16x32xbf16, #tpu.memory_space<vmem>>, vector<16x32xbf16>,
    return
  }
  func.func @transform_0(%arg0: i32, %arg1: i32) -> (i32, i32) {
    %c0_i32 = arith.constant 0 : i32
    %c0_i32_0 = arith.constant 0 : i32
    return %arg0, %c0_i32 : i32, i32
  }
  func.func @transform_1(%arg0: i32, %arg1: i32) -> (i32, i32) {
    %c0_i32 = arith.constant 0 : i32
    %c0_i32_0 = arith.constant 0 : i32
    return %c0_i32, %arg1 : i32, i32
  }
  func.func @transform_2(%arg0: i32, %arg1: i32) -> (i32, i32) {
    %c0_i32 = arith.constant 0 : i32
    %c0_i32_0 = arith.constant 0 : i32
    return %c0_i32, %arg1 : i32, i32
  }
  func.func @transform_3(%arg0: i32, %arg1: i32) -> (i32, i32) {
    %c0_i32 = arith.constant 0 : i32
    return %arg0, %arg1 : i32, i32
  }
  func.func @transform_4(%arg0: i32, %arg1: i32) -> (i32, i32) {
    %c0_i32 = arith.constant 0 : i32
    return %arg0, %arg1 : i32, i32
  }
}

module attributes {stable_mosaic.version = 11 : i64} {
  func.func @_linear_kernel(%arg0: i32, %arg1: i32, %arg2: memref<16x128xbf16, #tpu.memory_space<vmem>>, %arg3: memref<128x32xbf16, #tpu.memory_space<vmem>>, %arg4: memref<1x32xf32, #tpu.memory_space<vmem>>, %arg5: memref<16x32xbf16, #tpu.memory_space<vmem>>, %arg6: memref<16x32xbf16, #tpu.memory_space<vmem>>) attributes {dimension_semantics = [#tpu.dimension_semantics<parallel>, #tpu.dimension_semantics<parallel>], iteration_bounds = array<i64: 1, 1>, scalar_prefetch = 0 : i64, scratch_operands = 0 : i64, tpu.core_type = #tpu.core_type<tc>, window_params = [{transform_indices = @transform_0, window_bounds = array<i64: 16, 128>}, {transform_indices = @transform_1, window_bounds = array<i64: 128, 32>}, {transform_indices = @transform_2, window_bounds = array<i64: 1, 32>}, {transform_indices = @transform_3, window_bounds = array<i64: 16, 32>}, {transform_indices = @transform_4, window_bounds = array<i64: 16, 32>}]} {
    %c0 = arith.constant 0 : index
    %c0_0 = arith.constant 0 : index
    %0 = vector.load %arg2[%c0, %c0_0] : memref<16x128xbf16, #tpu.memory_space<vmem>>, vector<16x128xbf16>
    %1 = arith.extf %0 : vector<16x128xbf16> to vector<16x128xf32>
    %2 = arith.truncf %1 : vector<16x128xf32> to vector<16x128xbf16>
    %c0_1 = arith.constant 0 : index
    %c0_2 = arith.constant 0 : index
    %3 = vector.load %arg3[%c0_1, %c0_2] : memref<128x32xbf16, #tpu.memory_space<vmem>>, vector<128x32xbf16>
    %cst = arith.constant dense<0.000000e+00> : vector<16x32xf32>
    %4 = tpu.matmul %2, %3, %cst {dimension_numbers = #tpu.dot_dimension_numbers<[1], [0], [0], [1], [0, 0, 1, 1], [], []>} : vector<16x128xbf16>, vector<128x32xbf16>, vector<16x32xf32> -> vector<16x32xf32>
    %c0_3 = arith.constant 0 : index
    %c0_4 = arith.constant 0 : index
    %5 = vector.load %arg4[%c0_3, %c0_4] : memref<1x32xf32, #tpu.memory_space<vmem>>, vector<1x32xf32>
    %6 = vector.broadcast %5 : vector<1x32xf32> to vector<16x32xf32>
    %7 = arith.addf %4, %6 : vector<16x32xf32>
    %c0_5 = arith.constant 0 : index
    %c0_6 = arith.constant 0 : index
    %8 = vector.load %arg5[%c0_5, %c0_6] : memref<16x32xbf16, #tpu.memory_space<vmem>>, vector<16x32xbf16>
    %9 = arith.extf %8 : vector<16x32xbf16> to vector<16x32xf32>
    %10 = arith.addf %7, %9 : vector<16x32xf32>
    %11 = arith.truncf %10 : vector<16x32xf32> to vector<16x32xbf16>
    %c0_7 = arith.constant 0 : index
    %c0_8 = arith.constant 0 : index
    %12 = vector.load %arg6[%c0_7, %c0_8] : memref<16x32xbf16, #tpu.memory_space<vmem>>, vector<16x32xbf16>
    tpu.vector_store %arg6[%c0_7, %c0_8], %11 {strides = array<i32>} : memref<16x32xbf16, #tpu.memory_space<vmem>>, vector<16x32xbf16>,
    return
  }
  func.func @transform_0(%arg0: i32, %arg1: i32) -> (i32, i32) {
    %c0_i32 = arith.constant 0 : i32
    %c0_i32_0 = arith.constant 0 : i32
    return %arg0, %c0_i32 : i32, i32
  }
  func.func @transform_1(%arg0: i32, %arg1: i32) -> (i32, i32) {
    %c0_i32 = arith.constant 0 : i32
    %c0_i32_0 = arith.constant 0 : i32
    return %c0_i32, %arg1 : i32, i32
  }
  func.func @transform_2(%arg0: i32, %arg1: i32) -> (i32, i32) {
    %c0_i32 = arith.constant 0 : i32
    %c0_i32_0 = arith.constant 0 : i32
    return %c0_i32, %arg1 : i32, i32
  }
  func.func @transform_3(%arg0: i32, %arg1: i32) -> (i32, i32) {
    %c0_i32 = arith.constant 0 : i32
    return %arg0, %arg1 : i32, i32
  }
  func.func @transform_4(%arg0: i32, %arg1: i32) -> (i32, i32) {
    %c0_i32 = arith.constant 0 : i32
    return %arg0, %arg1 : i32, i32
  }
}

module attributes {stable_mosaic.version = 11 : i64} {
  func.func @_layernorm_kernel(%arg0: i32, %arg1: memref<2x32xbf16, #tpu.memory_space<vmem>>, %arg2: memref<1x32xf32, #tpu.memory_space<vmem>>, %arg3: memref<1x32xf32, #tpu.memory_space<vmem>>, %arg4: memref<2x32xf32, #tpu.memory_space<vmem>>) attributes {dimension_semantics = [#tpu.dimension_semantics<parallel>], iteration_bounds = array<i64: 1>, scalar_prefetch = 0 : i64, scratch_operands = 0 : i64, tpu.core_type = #tpu.core_type<tc>, window_params = [{transform_indices = @transform_0, window_bounds = array<i64: 2, 32>}, {pipeline_mode = #tpu.pipeline_mode<synchronous>, transform_indices = @transform_1, window_bounds = array<i64: 1, 32>}, {pipeline_mode = #tpu.pipeline_mode<synchronous>, transform_indices = @transform_2, window_bounds = array<i64: 1, 32>}, {transform_indices = @transform_3, window_bounds = array<i64: 2, 32>}]} {
    %c0 = arith.constant 0 : index
    %c0_0 = arith.constant 0 : index
    %0 = vector.load %arg1[%c0, %c0_0] : memref<2x32xbf16, #tpu.memory_space<vmem>>, vector<2x32xbf16>
    %1 = arith.extf %0 : vector<2x32xbf16> to vector<2x32xf32>
    %cst = arith.constant dense<0.000000e+00> : vector<2xf32>
    %2 = vector.multi_reduction <add>, %1, %cst [1] : vector<2x32xf32> to vector<2xf32>
    %3 = vector.shape_cast %2 : vector<2xf32> to vector<2x1xf32>
    %cst_1 = arith.constant 3.200000e+01 : f32
    %4 = vector.broadcast %cst_1 : f32 to vector<2x1xf32>
    %5 = arith.divf %3, %4 : vector<2x1xf32>
    %6 = vector.broadcast %5 : vector<2x1xf32> to vector<2x32xf32>
    %7 = arith.subf %1, %6 : vector<2x32xf32>
    %8 = arith.mulf %7, %7 : vector<2x32xf32>
    %cst_2 = arith.constant dense<0.000000e+00> : vector<2xf32>
    %9 = vector.multi_reduction <add>, %8, %cst_2 [1] : vector<2x32xf32> to vector<2xf32>
    %10 = vector.shape_cast %9 : vector<2xf32> to vector<2x1xf32>
    %cst_3 = arith.constant 3.200000e+01 : f32
    %11 = vector.broadcast %cst_3 : f32 to vector<2x1xf32>
    %12 = arith.divf %10, %11 : vector<2x1xf32>
    %13 = vector.broadcast %5 : vector<2x1xf32> to vector<2x32xf32>
    %14 = arith.subf %1, %13 : vector<2x32xf32>
    %cst_4 = arith.constant 9.99999974E-6 : f32
    %15 = vector.broadcast %cst_4 : f32 to vector<2x1xf32>
    %16 = arith.addf %12, %15 : vector<2x1xf32>
    %17 = math.rsqrt %16 : vector<2x1xf32>
    %18 = vector.broadcast %17 : vector<2x1xf32> to vector<2x32xf32>
    %19 = arith.mulf %14, %18 : vector<2x32xf32>
    %c0_5 = arith.constant 0 : index
    %c0_6 = arith.constant 0 : index
    %20 = vector.load %arg2[%c0_5, %c0_6] : memref<1x32xf32, #tpu.memory_space<vmem>>, vector<1x32xf32>
    %21 = vector.broadcast %20 : vector<1x32xf32> to vector<2x32xf32>
    %22 = arith.mulf %19, %21 : vector<2x32xf32>
    %c0_7 = arith.constant 0 : index
    %c0_8 = arith.constant 0 : index
    %23 = vector.load %arg3[%c0_7, %c0_8] : memref<1x32xf32, #tpu.memory_space<vmem>>, vector<1x32xf32>
    %24 = vector.broadcast %23 : vector<1x32xf32> to vector<2x32xf32>
    %25 = arith.addf %22, %24 : vector<2x32xf32>
    %c0_9 = arith.constant 0 : index
    %c0_10 = arith.constant 0 : index
    %26 = vector.load %arg4[%c0_9, %c0_10] : memref<2x32xf32, #tpu.memory_space<vmem>>, vector<2x32xf32>
    tpu.vector_store %arg4[%c0_9, %c0_10], %25 {strides = array<i32>} : memref<2x32xf32, #tpu.memory_space<vmem>>, vector<2x32xf32>,
    return
  }
  func.func @transform_0(%arg0: i32) -> (i32, i32) {
    %c0_i32 = arith.constant 0 : i32
    %c0_i32_0 = arith.constant 0 : i32
    return %arg0, %c0_i32 : i32, i32
  }
  func.func @transform_1(%arg0: i32) -> (i32, i32) {
    %c0_i32 = arith.constant 0 : i32
    %c0_i32_0 = arith.constant 0 : i32
    %c0_i32_1 = arith.constant 0 : i32
    return %c0_i32, %c0_i32_0 : i32, i32
  }
  func.func @transform_2(%arg0: i32) -> (i32, i32) {
    %c0_i32 = arith.constant 0 : i32
    %c0_i32_0 = arith.constant 0 : i32
    %c0_i32_1 = arith.constant 0 : i32
    return %c0_i32, %c0_i32_0 : i32, i32
  }
  func.func @transform_3(%arg0: i32) -> (i32, i32) {
    %c0_i32 = arith.constant 0 : i32
    %c0_i32_0 = arith.constant 0 : i32
    return %arg0, %c0_i32 : i32, i32
  }
}

</mosaic_0001>

<bundles_post_ra>
// kernel: gpt2_classifier_forward.13
= control target key start
LH: loop header
LB: loop body
LE: loop exit
PB: predicated region body
PF: predicated region fallthrough
CT: control target
= control target key end

     0   :  { %v143_v0 = vmov 0.0   ;;  %vm144_vm0 = vmmov 0   ;;  %vm48_vm1 = vcmask 261120   ;;  %vm107_vm2 = vcmask 257024   ;;  %s191_s1 = inlined_call_operand.vmem [shape: bf16[32,32], index: 1, kind: input, shape index: {}]   ;;  %s192_s0 = inlined_call_operand.vmem [shape: bf16[16,32], index: 0, kind: input, shape index: {}]   ;;  %s193_s3 = inlined_call_operand.vmem [shape: bf16[16,32], index: 3, kind: input, shape index: {}]   ;;  %s194_s2 = inlined_call_operand.vmem [shape: f32[1,32], index: 2, kind: input, shape index: {}]   ;;  %s195_s4 = inlined_call_operand.vmem [shape: bf16[16,32], index: 4, kind: output, shape index: {}]  }
   0x1   :  { %130 = vmatprep.subr.bf16.mxu0 %v143_v0  ;;  %v140_v1 = vld [vmem:[%s191_s1] sm:$0xff]   ;;  %134 = vmatprep.mubr.msk.bf16.mxu0 %vm144_vm0, %v143_v0  ;;  %v141_v2 = vld [vmem:[%s191_s1 + $0x8] sm:$0xff]  }
   0x2   :  { %131 = vmatpush3.bf16.msra.mxu0 %v140_v1  ;;  %v142_v3 = vld [vmem:[%s192_s0] sm:$0xff]  }
   0x3   :  { %132 = vmatprep.subr.bf16.mxu0 %v143_v0  ;;  %v124_v4 = vld [vmem:[%s193_s3] sm:$0xff]  }
   0x4   :  { %v114_v5 = vld [vmem:[%s194_s2] ss:$0 sm:$0xff]  ;;  %v125_v6 = vunpack.c.l.bf16 %v124_v4  ;;  %v126_v10 = vunpack.c.h.bf16 %v124_v4 }
   0x6   :  { %133 = vmatpush3.bf16.msra.mxu0 %v141_v2 }
   0x9   :  { %135 = vmatmul.mubr.msk.bf16.vlgmr.msra.gmra.mrb[0].mxu0 %vm48_vm1, %v142_v3 }
  0xdc   :  { %v86_v7 = vpop.f32.mrb[0].mxu0 }
  0xdd   :  { %v87_v8 = vadd.f32 %v114_v5, %v86_v7  ;;  %v136_v9 = vpop.f32.mrb[1].mxu0 }
  0xde   :  { %v89_v11 = vpop.f32.mrb[2].mxu0 }
  0xdf   :  { %v97_v12 = vadd.f32 %v125_v6, %v87_v8  ;;  %v90_v13 = vadd.f32 %v114_v5, %v89_v11  ;;  %v137_v14 = vpop.f32.mrb[3].mxu0 }
  0xe1   :  { %v121_v15 = vpack.c.bf16 %v97_v12, %v97_v12  ;;  %v98_v16 = vadd.f32 %v126_v10, %v90_v13 }
  0xe3   :  { %108 = vst.msk [vmem:[%s195_s4] sm:$0xf] %vm107_vm2, %v121_v15  ;;  %v122_v17 = vpack.c.bf16 %v98_v16, %v98_v16 }
  0xe5   :  { %109 = vst.msk [vmem:[%s195_s4 + $0x4] sm:$0xf] %vm107_vm2, %v122_v17 }

// kernel: gpt2_classifier_forward.11
= control target key start
LH: loop header
LB: loop body
LE: loop exit
PB: predicated region body
PF: predicated region fallthrough
CT: control target
= control target key end

     0   :  { %vm25_vm0 = vcmask 261120   ;;  %v187_v16 = vmov 0.0   ;;  %vm188_vm1 = vmmov 0   ;;  %vm147_vm2 = vcmask 781312   ;;  %s248_s0 = inlined_call_operand.vmem [shape: bf16[16,32], index: 0, kind: input, shape index: {}]   ;;  %s249_s3 = inlined_call_operand.vmem [shape: bf16[32,96], index: 3, kind: input, shape index: {}]   ;;  %s250_s1 = inlined_call_operand.vmem [shape: f32[1,32], index: 1, kind: input, shape index: {}]   ;;  %s251_s2 = inlined_call_operand.vmem [shape: f32[1,32], index: 2, kind: input, shape index: {}]   ;;  %s252_s4 = inlined_call_operand.vmem [shape: f32[1,96], index: 4, kind: input, shape index: {}]   ;;  %s253_s5 = inlined_call_operand.vmem [shape: bf16[16,96], index: 5, kind: output, shape index: {}]  }
   0x1   :  { %v165_v0 = vld [vmem:[%s248_s0] sm:$0xff]   ;;  %171 = vmatprep.subr.bf16.mxu0 %v187_v16  ;;  %v182_v17 = vld [vmem:[%s249_s3 + $0x8] sm:$0xff]   ;;  %175 = vmatprep.mubr.msk.bf16.mxu0 %vm188_vm1, %v187_v16 }
   0x2   :  { %v166_v1 = vunpack.c.l.bf16 %v165_v0  ;;  %v167_v2 = vunpack.c.h.bf16 %v165_v0  ;;  %v181_v15 = vld [vmem:[%s249_s3] sm:$0xff]  }
   0x3   :  { %172 = vmatpush3.bf16.msra.mxu0 %v181_v15  ;;  %v154_v26 = vld [vmem:[%s250_s1] ss:$0 sm:$0xff] }
   0x4   :  { %v26_v3 = vsel %vm25_vm0, %v166_v1, 0.0  ;;  %v29_v4 = vsel %vm25_vm0, %v167_v2, 0.0  ;;  %173 = vmatprep.subr.bf16.mxu0 %v187_v16  ;;  %v155_v30 = vld [vmem:[%s251_s2] ss:$0 sm:$0xff] }
   0x5   :  { %27 = vadd.xlane.f32.xlu0 %v26_v3  ;;  %v156_v35 = vld [vmem:[%s252_s4] ss:$0 sm:$0xff] }
   0x7   :  { %174 = vmatpush3.bf16.msra.mxu0 %v182_v17 }
   0x9   :  { %30 = vadd.xlane.f32.xlu0 %v29_v4 }
  0x92   :  { %v28_v5 = vpop.xlane.xlu0 %27 }
  0x93   :  { %v33_v6 = vmul.f32 0.03125, %v28_v5 }
  0x95   :  { %v35_v7 = vsub.f32 %v166_v1, %v33_v6 }
  0x96   :  { %v31_v8 = vpop.xlane.xlu0 %30 }
  0x97   :  { %v34_v9 = vmul.f32 0.03125, %v31_v8  ;;  %v37_v10 = vmul.f32 %v35_v7, %v35_v7 }
  0x99   :  { %v36_v11 = vsub.f32 %v167_v2, %v34_v9  ;;  %v39_v12 = vsel %vm25_vm0, %v37_v10, 0.0 }
  0x9a   :  { %40 = vadd.xlane.f32.xlu1 %v39_v12 }
  0x9b   :  { %v38_v13 = vmul.f32 %v36_v11, %v36_v11 }
  0x9d   :  { %v42_v14 = vsel %vm25_vm0, %v38_v13, 0.0 }
  0x9e   :  { %43 = vadd.xlane.f32.xlu1 %v42_v14 }
 0x127   :  { %v41_v18 = vpop.xlane.xlu1 %40 }
 0x128   :  { %v45_v19 = vmul.f32 0.03125, %v41_v18 }
 0x12a   :  { %v47_v20 = vadd.f32 1e-05, %v45_v19 }
 0x12b   :  { %v44_v21 = vpop.xlane.xlu1 %43 }
 0x12c   :  { %183 = vrsqrt.f32 %v47_v20  ;;  %v46_v22 = vmul.f32 0.03125, %v44_v21 }
 0x12e   :  { %v48_v23 = vadd.f32 1e-05, %v46_v22 }
 0x130   :  { %185 = vrsqrt.f32 %v48_v23 }
 0x136   :  { %v184_v24 = vpop.eup %183 }
 0x137   :  { %v51_v25 = vmul.f32 %v184_v24, %v35_v7 }
 0x139   :  { %v60_v29 = vmul.f32 %v154_v26, %v51_v25 }
 0x13a   :  { %v186_v27 = vpop.eup %185 }
 0x13b   :  { %v52_v28 = vmul.f32 %v186_v27, %v36_v11  ;;  %v69_v32 = vadd.f32 %v155_v30, %v60_v29 }
 0x13d   :  { %v61_v31 = vmul.f32 %v154_v26, %v52_v28 }
 0x13f   :  { %v70_v33 = vadd.f32 %v155_v30, %v61_v31 }
 0x141   :  { %v71_v34 = vpack.c.bf16 %v70_v33, %v69_v32 }
 0x143   :  { %176 = vmatmul.mubr.msk.bf16.vlgmr.msra.gmra.mrb[0].mxu0 %vm25_vm0, %v71_v34 }
 0x216   :  { %v132_v36 = vpop.f32.mrb[0].mxu0 }
 0x217   :  { %v133_v37 = vadd.f32 %v156_v35, %v132_v36  ;;  %v177_v38 = vpop.f32.mrb[1].mxu0 }
 0x218   :  { %v135_v39 = vpop.f32.mrb[2].mxu0 }
 0x219   :  { %v162_v40 = vpack.c.bf16 %v133_v37, %v133_v37  ;;  %v136_v41 = vadd.f32 %v156_v35, %v135_v39  ;;  %v178_v42 = vpop.f32.mrb[3].mxu0 }
 0x21b   :  { %148 = vst.msk [vmem:[%s253_s5] sm:$0xf] %vm147_vm2, %v162_v40  ;;  %v163_v43 = vpack.c.bf16 %v136_v41, %v136_v41 }
 0x21d   :  { %149 = vst.msk [vmem:[%s253_s5 + $0x4] sm:$0xf] %vm147_vm2, %v163_v43 }

// kernel: gpt2_classifier_forward.12
= control target key start
LH: loop header
LB: loop body
LE: loop exit
PB: predicated region body
PF: predicated region fallthrough
CT: control target
= control target key end

     0   :  { %s662_s9 = smov 0   ;;  %s664_s10 = smov 0   ;;  %s739_s0 = inlined_call_operand.vmem [shape: bf16[16,96], index: 0, kind: input, shape index: {}]   ;;  %s740_s1 = inlined_call_operand.vmem [shape: s32[2,1,8], index: 1, kind: input, shape index: {}]   ;;  %s741_s2 = inlined_call_operand.vmem [shape: bf16[16,32], index: 2, kind: output, shape index: {}]  }
   0x1   :  { %s666_s11 = smov 0  }
   0x2 LB: > { %s24_s12 = sadd.s32 1, %s632_s10  ;;  %p526_p0 = scmp.ge.s32.totalorder %s636_s11, 1  ;;  %s636_s11 = sphi %s666_s11, %s12_s11   ;;  %s632_s10 = sphi %s664_s10, %s745_s10   ;;  %s628_s9 = sphi %s662_s9, %s744_s9  }
   0x3   : > { %p26_p1 = scmp.ge.s32.totalorder %s24_s12, 2  ;;  %p133_p2 = scmp.lt.s32.totalorder %s636_s11, 3 }
   0x5   : > { %s747_s12 = smov (%p26_p1, %s24_s12), 0  ;;  %p134_p3 = pnand %p526_p0, %p133_p2 }
   0x6   : > { %p157_p4 = scmp.lt.s32.totalorder (!%p134_p3), %s628_s9, 1  ;;  %v638_v0 = vmov (!%p134_p3), 0.0   ;;  %vm639_vm0 = vmmov (!%p134_p3), 0   ;;  %s640_s17 = smov (!%p134_p3), 96   ;;  %vm190_vm1 = vcmask (!%p134_p3), 130048   ;;  %v172_v8 = vlaneseq (!%p134_p3) }
   0x7   : > { %137 = sbr.rel (%p134_p3) target bundleno = 1234 (0x4d2), region = 28  ;;  %544 = vmatprep.subr.bf16.mxu0 (!%p134_p3), %v638_v0  ;;  %546 = vmatprep.mubr.msk.bf16.mxu0 (!%p134_p3), %vm639_vm0, %v638_v0  ;;  %s641_s18 = smov (!%p134_p3), 64   ;;  %v644_v12 = vmov (!%p134_p3), 0   ;;  %vm250_vm6 = vcmask (!%p134_p3), 64512   ;;  %vm272_vm7 = vcmask (!%p134_p3), 1043456   ;;  %vm444_vm8 = vcmask (!%p134_p3), 257024  }
   0x8   : > { %550 = vmatprep.subr.bf16.mxu1 (!%p134_p3), %v638_v0  ;;  %552 = vmatprep.mubr.msk.bf16.mxu1 (!%p134_p3), %vm639_vm0, %v638_v0  ;;  %s642_s19 = smov (!%p134_p3), 80   ;;  %s643_s20 = smov (!%p134_p3), 112   ;;  %v173_v10 = vshrl.u32 (!%p134_p3), %v172_v8, 7  ;;  %v238_v14 = vand.u32 (!%p134_p3), 127, %v172_v8 }
   0x9   : > { %s645_s24 = smov (!%p134_p3), 48   ;;  %s646_s25 = smov (!%p134_p3), 16  }
   0xa   : > { %v245_v11 = vsub.s32 (!%p134_p3), 0, %v173_v10  ;;  %vm241_vm3 = vcmp.le.s32.totalorder (!%p134_p3), %v238_v14, %v173_v10 }
   0xe   : > { %s749_s9 = smov (!%p157_p4, %s628_s9), 1 }
   0xf   : > { %s527_s13 = sshll.u32 %s749_s9, 2  ;;  %s163_s23 = scalar_lea.vmem %s740_s1, %s749_s9 }
  0x10   : > { %s160_s16 = scalar_lea.vmem %s739_s0, %s527_s13  ;;  %v239_v9 = vld [vmem:[%s163_s23] sm:$0x1]  ;;  %s168_s28 = scalar_lea.vmem %s741_s2, %s527_s13 }
  0x11   : > { %v601_v1 = vld [vmem:[%s160_s16] ss:$0 sps:$4 sm:$0xff]   ;;  %vm240_vm2 = vcmp.gt.s32.totalorder %v239_v9, 0 }
  0x12   : > { %188 = vrot.lane.b32.xlu0 %v601_v1, %s640_s17  ;;  %v180_v2 = vld [vmem:[%s160_s16] sm:$0xf]  ;;  %267 = vrot.lane.b32.xlu1 %v601_v1, %s641_s18  ;;  %v242_v13 = vsel %vm240_vm2, 1, %v644_v12 }
  0x13   : > { %v181_v3 = vunpack.c.l.bf16 %v180_v2  ;;  %v246_v15 = vrot.slane %v242_v13, %v245_v11 }
  0x15   : > { %v182_v6 = vmul.f32 0.25, %v181_v3  ;;  %vm247_vm4 = vcmp.eq.s32.totalorder %v246_v15, 1 }
  0x16   : > { %322 = vrot.lane.b32.xlu1 %v601_v1, %s642_s19  ;;  %vm703_vm5 = vmand %vm241_vm3, %vm247_vm4 }
  0x17   : > { %v183_v7 = vpack.c.bf16 %v182_v6, %v182_v6 }
  0x1a   : > { %320 = vrot.lane.b32.xlu1 %v183_v7, %s643_s20 }
  0x84   : > { %v189_v4 = vpop.permute.xlu0 %188  ;;  %v268_v23 = vpop.permute.xlu1 %267 }
  0x85   : > { %v195_v5 = vsel %vm190_vm1, %v189_v4, 0  ;;  %v274_v24 = vsel %vm272_vm7, %v268_v23, 0 }
  0x86   : > { %545 = vmatpush3.bf16.xpose.msra.mxu0 %v195_v5  ;;  %551 = vmatpush3.bf16.msra.mxu1 %v274_v24 }
  0x87   : > { %562 = vmatprep.subr.bf16.mxu0 %v638_v0  ;;  %556 = vmatprep.subr.bf16.mxu1 %v638_v0 }
  0x88   : > { %v323_v29 = vpop.permute.xlu1 %322 }
  0x89   : > { %v328_v31 = vsel %vm190_vm1, %v323_v29, 0 }
  0x8c   : > { %v321_v33 = vpop.permute.xlu1 %320 }
  0x8d   : > { %547 = vmatmul.mubr.msk.bf16.vlgmr.msra.gmra.mrb[0].mxu0 %vm190_vm1, %v183_v7 }
  0x8e   : > { %564 = vmatprep.mubr.msk.bf16.mxu0 %vm639_vm0, %v638_v0 }
 0x160   : > { %v231_v17 = vpop.f32.mrb[0].mxu0 }
 0x161   : > { %v249_v18 = vsel %vm703_vm5, %v231_v17, -1e+30  ;;  %v548_v19 = vpop.f32.mrb[1].mxu0 }
 0x162   : > { %v234_v20 = vpop.f32.mrb[2].mxu0  ;;  %v251_v21 = vsel %vm250_vm6, %v249_v18, -inf }
 0x163   : > { %252 = vmax.xlane.f32.xlu0 %v251_v21  ;;  %v549_v22 = vpop.f32.mrb[3].mxu0 }
 0x179   : > { %387 = vrot.lane.b32.xlu0 %v601_v1, %s645_s24 }
 0x1f0   : > { %v253_v25 = vpop.xlane.xlu0 %252 }
 0x1f1   : > { %v254_v26 = vmax.f32 %v253_v25, -1e+30 }
 0x1f3   : > { %v258_v27 = vsub.f32 %v249_v18, %v254_v26  ;;  %v255_v34 = vsub.f32 -1e+30, %v254_v26 }
 0x1f4   : > { %v388_v49 = vpop.permute.xlu0 %387 }
 0x1f5   : > { %v259_v28 = vmul.f32 1.442695, %v258_v27  ;;  %v256_v35 = vmul.f32 1.442695, %v255_v34  ;;  %v393_v50 = vsel %vm272_vm7, %v388_v49, 0 }
 0x1f6   : > { %563 = vmatpush3.bf16.msra.mxu0 %v393_v50 }
 0x1f7   : > { %602 = vpow2.f32 %v259_v28 }
 0x1f8   : > { %604 = vpow2.f32 %v256_v35 }
 0x201   : > { %v603_v30 = vpop.eup %602 }
 0x202   : > { %v266_v32 = vpack.c.bf16 %v603_v30, %v603_v30  ;;  %v605_v36 = vpop.eup %604  ;;  %v262_v58 = vsel %vm250_vm6, %v603_v30, 0.0 }
 0x203   : > { %v261_v37 = vmul.f32 0.0, %v605_v36 }
 0x204   : > { %553 = vmatmul.mubr.msk.bf16.vlgmr.msra.gmra.mrb[0].mxu1 %vm250_vm6, %v266_v32 }
 0x205   : > { %557 = vmatpush3.bf16.xpose.msra.mxu1 %v328_v31  ;;  %558 = vmatprep.mubr.msk.bf16.mxu1 %vm639_vm0, %v638_v0 }
 0x20c   : > { %559 = vmatmul.mubr.msk.bf16.vlgmr.msra.gmra.mrb[4].mxu1 %vm190_vm1, %v321_v33 }
 0x2d7   : > { %v310_v38 = vpop.f32.mrb[0].mxu1 }
 0x2d8   : > { %v316_v39 = vadd.f32 %v310_v38, %v261_v37  ;;  %v554_v40 = vpop.f32.mrb[1].mxu1 }
 0x2d9   : > { %v313_v41 = vpop.f32.mrb[2].mxu1 }
 0x2da   : > { %v555_v42 = vpop.f32.mrb[3].mxu1 }
 0x2df   : > { %v364_v43 = vpop.f32.mrb[4].mxu1 }
 0x2e0   : > { %v370_v44 = vsel %vm703_vm5, %v364_v43, -1e+30  ;;  %v560_v45 = vpop.f32.mrb[5].mxu1 }
 0x2e1   : > { %v367_v46 = vpop.f32.mrb[6].mxu1  ;;  %v371_v47 = vsel %vm250_vm6, %v370_v44, -inf }
 0x2e2   : > { %372 = vmax.xlane.f32.xlu1 %v371_v47  ;;  %v561_v48 = vpop.f32.mrb[7].mxu1 }
 0x36f   : > { %v373_v51 = vpop.xlane.xlu1 %372 }
 0x370   : > { %v374_v52 = vmax.f32 %v373_v51, -1e+30 }
 0x372   : > { %v378_v53 = vsub.f32 %v370_v44, %v374_v52  ;;  %v375_v0 = vsub.f32 -1e+30, %v374_v52 }
 0x374   : > { %v379_v54 = vmul.f32 1.442695, %v378_v53  ;;  %v376_v1 = vmul.f32 1.442695, %v375_v0 }
 0x376   : > { %606 = vpow2.f32 %v379_v54 }
 0x380   : > { %v607_v55 = vpop.eup %606 }
 0x381   : > { %v382_v56 = vsel %vm250_vm6, %v607_v55, 0.0  ;;  %v386_v57 = vpack.c.bf16 %v607_v55, %v607_v55 }
 0x382   : > { %383 = vadd.xlane.f32.xlu1 %v382_v56 }
 0x383   : > { %565 = vmatmul.mubr.msk.bf16.vlgmr.msra.gmra.mrb[4].mxu0 %vm250_vm6, %v386_v57 }
 0x386   : > { %263 = vadd.xlane.f32.xlu1 %v262_v58 }
 0x40f   : > { %v384_v59 = vpop.xlane.xlu1 %383 }
 0x413   : > { %v264_v60 = vpop.xlane.xlu1 %263 }
 0x414   : > { %v265_v61 = vadd.f32 %v264_v60, %v261_v37 }
 0x416   : > { %608 = vrcp.f32 %v265_v61 }
 0x417   : > { %610 = vpow2.f32 %v376_v1 }
 0x420   : > { %v609_v62 = vpop.eup %608 }
 0x421   : > { %v318_v63 = vmul.f32 %v609_v62, %v316_v39  ;;  %v611_v2 = vpop.eup %610 }
 0x422   : > { %v381_v3 = vmul.f32 0.0, %v611_v2 }
 0x424   : > { %v385_v4 = vadd.f32 %v384_v59, %v381_v3 }
 0x426   : > { %612 = vrcp.f32 %v385_v4 }
 0x430   : > { %v613_v8 = vpop.eup %612 }
 0x456   : > { %v429_v5 = vpop.f32.mrb[4].mxu0 }
 0x457   : > { %v435_v6 = vadd.f32 %v429_v5, %v381_v3  ;;  %v566_v7 = vpop.f32.mrb[5].mxu0 }
 0x458   : > { %v432_v9 = vpop.f32.mrb[6].mxu0 }
 0x459   : > { %v437_v10 = vmul.f32 %v613_v8, %v435_v6  ;;  %v567_v11 = vpop.f32.mrb[7].mxu0 }
 0x45b   : > { %439 = vrot.lane.b32.xlu1 %v437_v10, %s646_s25 }
 0x4cd   : > { %v440_v12 = vpop.permute.xlu1 %439 }
 0x4ce   : > { %v442_v13 = vsel %vm190_vm1, %v318_v63, %v440_v12 }
 0x4cf   : > { %v443_v14 = vpack.c.bf16 %v442_v13, %v442_v13 }
 0x4d1   : > { %445 = vst.msk [vmem:[%s168_s28] sm:$0xf] %vm444_vm8, %v443_v14 }
 0x4d2 PF: > { %s12_s11 = sadd.s32 1, %s636_s11   ;;  %s744_s9 = smov %s632_s10 }
 0x4d3   : > { %p9_p5 = scmp.ge.s32.totalorder %s12_s11, 4   ;;  %s745_s10 = smov %s747_s12 }
 0x4d5   :  { %11 = sbr.rel (!%p9_p5) target bundleno = 2 (0x2), region = 62 }

// kernel: gpt2_classifier_forward.14
= control target key start
LH: loop header
LB: loop body
LE: loop exit
PB: predicated region body
PF: predicated region fallthrough
CT: control target
= control target key end

     0   :  { %vm25_vm0 = vcmask 261120   ;;  %v213_v16 = vmov 0.0   ;;  %vm214_vm1 = vmmov 0   ;;  %s271_s0 = inlined_call_operand.vmem [shape: bf16[16,32], index: 0, kind: input, shape index: {}]   ;;  %s272_s3 = inlined_call_operand.vmem [shape: bf16[32,128], index: 3, kind: input, shape index: {}]   ;;  %s273_s1 = inlined_call_operand.vmem [shape: f32[1,32], index: 1, kind: input, shape index: {}]   ;;  %s274_s2 = inlined_call_operand.vmem [shape: f32[1,32], index: 2, kind: input, shape index: {}]   ;;  %s275_s4 = inlined_call_operand.vmem [shape: f32[1,128], index: 4, kind: input, shape index: {}]   ;;  %s276_s5 = inlined_call_operand.vmem [shape: bf16[16,128], index: 5, kind: output, shape index: {}]  }
   0x1   :  { %v182_v0 = vld [vmem:[%s271_s0] sm:$0xff]   ;;  %193 = vmatprep.subr.bf16.mxu0 %v213_v16  ;;  %v204_v17 = vld [vmem:[%s272_s3 + $0x8] sm:$0xff]   ;;  %197 = vmatprep.mubr.msk.bf16.mxu0 %vm214_vm1, %v213_v16 }
   0x2   :  { %v183_v1 = vunpack.c.l.bf16 %v182_v0  ;;  %v184_v2 = vunpack.c.h.bf16 %v182_v0  ;;  %v203_v15 = vld [vmem:[%s272_s3] sm:$0xff]  }
   0x3   :  { %194 = vmatpush3.bf16.msra.mxu0 %v203_v15  ;;  %v171_v26 = vld [vmem:[%s273_s1] ss:$0 sm:$0xff] }
   0x4   :  { %v26_v3 = vsel %vm25_vm0, %v183_v1, 0.0  ;;  %v29_v4 = vsel %vm25_vm0, %v184_v2, 0.0  ;;  %195 = vmatprep.subr.bf16.mxu0 %v213_v16  ;;  %v172_v30 = vld [vmem:[%s274_s2] ss:$0 sm:$0xff] }
   0x5   :  { %27 = vadd.xlane.f32.xlu0 %v26_v3  ;;  %v173_v35 = vld [vmem:[%s275_s4] ss:$0 sm:$0xff] }
   0x7   :  { %196 = vmatpush3.bf16.msra.mxu0 %v204_v17 }
   0x9   :  { %30 = vadd.xlane.f32.xlu0 %v29_v4 }
  0x92   :  { %v28_v5 = vpop.xlane.xlu0 %27 }
  0x93   :  { %v33_v6 = vmul.f32 0.03125, %v28_v5 }
  0x95   :  { %v35_v7 = vsub.f32 %v183_v1, %v33_v6 }
  0x96   :  { %v31_v8 = vpop.xlane.xlu0 %30 }
  0x97   :  { %v34_v9 = vmul.f32 0.03125, %v31_v8  ;;  %v37_v10 = vmul.f32 %v35_v7, %v35_v7 }
  0x99   :  { %v36_v11 = vsub.f32 %v184_v2, %v34_v9  ;;  %v39_v12 = vsel %vm25_vm0, %v37_v10, 0.0 }
  0x9a   :  { %40 = vadd.xlane.f32.xlu1 %v39_v12 }
  0x9b   :  { %v38_v13 = vmul.f32 %v36_v11, %v36_v11 }
  0x9d   :  { %v42_v14 = vsel %vm25_vm0, %v38_v13, 0.0 }
  0x9e   :  { %43 = vadd.xlane.f32.xlu1 %v42_v14 }
 0x127   :  { %v41_v18 = vpop.xlane.xlu1 %40 }
 0x128   :  { %v45_v19 = vmul.f32 0.03125, %v41_v18 }
 0x12a   :  { %v47_v20 = vadd.f32 1e-05, %v45_v19 }
 0x12b   :  { %v44_v21 = vpop.xlane.xlu1 %43 }
 0x12c   :  { %205 = vrsqrt.f32 %v47_v20  ;;  %v46_v22 = vmul.f32 0.03125, %v44_v21 }
 0x12e   :  { %v48_v23 = vadd.f32 1e-05, %v46_v22 }
 0x130   :  { %207 = vrsqrt.f32 %v48_v23 }
 0x136   :  { %v206_v24 = vpop.eup %205 }
 0x137   :  { %v51_v25 = vmul.f32 %v206_v24, %v35_v7 }
 0x139   :  { %v60_v29 = vmul.f32 %v171_v26, %v51_v25 }
 0x13a   :  { %v208_v27 = vpop.eup %207 }
 0x13b   :  { %v52_v28 = vmul.f32 %v208_v27, %v36_v11  ;;  %v69_v32 = vadd.f32 %v172_v30, %v60_v29 }
 0x13d   :  { %v61_v31 = vmul.f32 %v171_v26, %v52_v28 }
 0x13f   :  { %v70_v33 = vadd.f32 %v172_v30, %v61_v31 }
 0x141   :  { %v71_v34 = vpack.c.bf16 %v70_v33, %v69_v32 }
 0x143   :  { %198 = vmatmul.mubr.msk.bf16.vlgmr.msra.gmra.mrb[0].mxu0 %vm25_vm0, %v71_v34 }
 0x216   :  { %v132_v36 = vpop.f32.mrb[0].mxu0 }
 0x217   :  { %v133_v37 = vadd.f32 %v173_v35, %v132_v36  ;;  %v199_v38 = vpop.f32.mrb[1].mxu0 }
 0x218   :  { %v135_v39 = vpop.f32.mrb[2].mxu0 }
 0x219   :  { %v141_v40 = vmul.f32 0.044715, %v133_v37  ;;  %v136_v41 = vadd.f32 %v173_v35, %v135_v39  ;;  %v200_v42 = vpop.f32.mrb[3].mxu0  ;;  %v139_v55 = vmul.f32 0.5, %v133_v37 }
 0x21b   :  { %v143_v43 = vmul.f32 %v141_v40, %v133_v37  ;;  %v142_v44 = vmul.f32 0.044715, %v136_v41  ;;  %v140_v56 = vmul.f32 0.5, %v136_v41 }
 0x21d   :  { %v145_v45 = vmul.f32 %v143_v43, %v133_v37  ;;  %v144_v46 = vmul.f32 %v142_v44, %v136_v41 }
 0x21f   :  { %v147_v47 = vadd.f32 %v145_v45, %v133_v37  ;;  %v146_v48 = vmul.f32 %v144_v46, %v136_v41 }
 0x221   :  { %v149_v49 = vmul.f32 0.7978846, %v147_v47  ;;  %v148_v50 = vadd.f32 %v146_v48, %v136_v41 }
 0x223   :  { %209 = vtanh.f32 %v149_v49  ;;  %v150_v51 = vmul.f32 0.7978846, %v148_v50 }
 0x225   :  { %211 = vtanh.f32 %v150_v51 }
 0x22d   :  { %v210_v52 = vpop.eup %209 }
 0x22e   :  { %v153_v53 = vadd.f32 1.0, %v210_v52 }
 0x22f   :  { %v212_v54 = vpop.eup %211 }
 0x230   :  { %v154_v57 = vadd.f32 1.0, %v212_v54  ;;  %v155_v58 = vmul.f32 %v153_v53, %v139_v55 }
 0x232   :  { %v156_v59 = vmul.f32 %v154_v57, %v140_v56 }
 0x234   :  { %v188_v60 = vpack.c.bf16 %v156_v59, %v155_v58 }
 0x236   :  { %189 = vst [vmem:[%s276_s5] sm:$0xff] %v188_v60  }

// kernel: gpt2_classifier_forward.15
= control target key start
LH: loop header
LB: loop body
LE: loop exit
PB: predicated region body
PF: predicated region fallthrough
CT: control target
= control target key end

     0   :  { %v217_v0 = vmov 0.0   ;;  %vm218_vm0 = vmmov 0   ;;  %vm152_vm1 = vcmask 257024   ;;  %s283_s1 = inlined_call_operand.vmem [shape: bf16[128,32], index: 1, kind: input, shape index: {}]   ;;  %s284_s0 = inlined_call_operand.vmem [shape: bf16[16,128], index: 0, kind: input, shape index: {}]   ;;  %s285_s3 = inlined_call_operand.vmem [shape: bf16[16,32], index: 3, kind: input, shape index: {}]   ;;  %s286_s2 = inlined_call_operand.vmem [shape: f32[1,32], index: 2, kind: input, shape index: {}]   ;;  %s287_s4 = inlined_call_operand.vmem [shape: bf16[16,32], index: 4, kind: output, shape index: {}]  }
   0x1   :  { %186 = vmatprep.subr.bf16.mxu0 %v217_v0  ;;  %v208_v1 = vld [vmem:[%s283_s1] sm:$0xff]   ;;  %202 = vmatprep.mubr.msk.bf16.mxu0 %vm218_vm0, %v217_v0  ;;  %v209_v2 = vld [vmem:[%s283_s1 + $0x8] sm:$0xff]   ;;  %v210_v3 = vld [vmem:[%s283_s1 + $0x10] sm:$0xff]  }
   0x2   :  { %187 = vmatpush3.bf16.msra.mxu0 %v208_v1  ;;  %v211_v4 = vld [vmem:[%s283_s1 + $0x18] sm:$0xff]   ;;  %v212_v5 = vld [vmem:[%s283_s1 + $0x20] sm:$0xff]   ;;  %v213_v6 = vld [vmem:[%s283_s1 + $0x28] sm:$0xff]  }
   0x3   :  { %188 = vmatprep.subr.bf16.mxu0 %v217_v0  ;;  %v214_v7 = vld [vmem:[%s283_s1 + $0x30] sm:$0xff]   ;;  %v215_v8 = vld [vmem:[%s283_s1 + $0x38] sm:$0xff]   ;;  %v216_v9 = vld [vmem:[%s284_s0] sm:$0xff]  }
   0x4   :  { %v174_v10 = vld [vmem:[%s285_s3] sm:$0xff]  }
   0x5   :  { %v159_v11 = vld [vmem:[%s286_s2] ss:$0 sm:$0xff]  ;;  %v175_v12 = vunpack.c.l.bf16 %v174_v10  ;;  %v176_v16 = vunpack.c.h.bf16 %v174_v10 }
   0x6   :  { %189 = vmatpush3.bf16.msra.mxu0 %v209_v2 }
   0x7   :  { %190 = vmatprep.subr.bf16.mxu0 %v217_v0 }
   0xa   :  { %191 = vmatpush3.bf16.msra.mxu0 %v210_v3 }
   0xb   :  { %192 = vmatprep.subr.bf16.mxu0 %v217_v0 }
   0xe   :  { %193 = vmatpush3.bf16.msra.mxu0 %v211_v4 }
   0xf   :  { %194 = vmatprep.subr.bf16.mxu0 %v217_v0 }
  0x12   :  { %195 = vmatpush3.bf16.msra.mxu0 %v212_v5 }
  0x13   :  { %196 = vmatprep.subr.bf16.mxu0 %v217_v0 }
  0x16   :  { %197 = vmatpush3.bf16.msra.mxu0 %v213_v6 }
  0x17   :  { %198 = vmatprep.subr.bf16.mxu0 %v217_v0 }
  0x1a   :  { %199 = vmatpush3.bf16.msra.mxu0 %v214_v7 }
  0x1b   :  { %200 = vmatprep.subr.bf16.mxu0 %v217_v0 }
  0x1e   :  { %201 = vmatpush3.bf16.msra.mxu0 %v215_v8 }
  0x21   :  { %203 = vmatmul.mubr.bf16.vlgmr.msra.gmra.mrb[0].mxu0 %v216_v9 }
  0xf4   :  { %v131_v13 = vpop.f32.mrb[0].mxu0 }
  0xf5   :  { %v132_v14 = vadd.f32 %v159_v11, %v131_v13  ;;  %v204_v15 = vpop.f32.mrb[1].mxu0 }
  0xf6   :  { %v134_v17 = vpop.f32.mrb[2].mxu0 }
  0xf7   :  { %v142_v18 = vadd.f32 %v175_v12, %v132_v14  ;;  %v135_v19 = vadd.f32 %v159_v11, %v134_v17  ;;  %v205_v20 = vpop.f32.mrb[3].mxu0 }
  0xf9   :  { %v171_v21 = vpack.c.bf16 %v142_v18, %v142_v18  ;;  %v143_v22 = vadd.f32 %v176_v16, %v135_v19 }
  0xfb   :  { %153 = vst.msk [vmem:[%s287_s4] sm:$0xf] %vm152_vm1, %v171_v21  ;;  %v172_v23 = vpack.c.bf16 %v143_v22, %v143_v22 }
  0xfd   :  { %154 = vst.msk [vmem:[%s287_s4 + $0x4] sm:$0xf] %vm152_vm1, %v172_v23 }

// kernel: gpt2_classifier_forward.21
= control target key start
LH: loop header
LB: loop body
LE: loop exit
PB: predicated region body
PF: predicated region fallthrough
CT: control target
= control target key end

     0   :  { %vm16_vm0 = vcmask 254976   ;;  %s91_s0 = inlined_call_operand.vmem [shape: bf16[2,32], index: 0, kind: input, shape index: {}]   ;;  %s92_s1 = inlined_call_operand.vmem [shape: f32[1,32], index: 1, kind: input, shape index: {}]   ;;  %s93_s2 = inlined_call_operand.vmem [shape: f32[1,32], index: 2, kind: input, shape index: {}]   ;;  %s94_s3 = inlined_call_operand.vmem [shape: f32[2,32], index: 3, kind: output, shape index: {}]  }
   0x1   :  { %v14_v0 = vld [vmem:[%s91_s0] sm:$0x1] }
   0x2   :  { %v15_v1 = vunpack.c.l.bf16 %v14_v0  ;;  %v52_v12 = vld [vmem:[%s92_s1] ss:$0 sm:$0xff] }
   0x3   :  { %v53_v14 = vld [vmem:[%s93_s2] ss:$0 sm:$0xff] }
   0x4   :  { %v17_v2 = vsel %vm16_vm0, %v15_v1, 0.0 }
   0x5   :  { %18 = vadd.xlane.f32.xlu0 %v17_v2 }
  0x92   :  { %v19_v3 = vpop.xlane.xlu0 %18 }
  0x93   :  { %v21_v4 = vmul.f32 0.03125, %v19_v3 }
  0x95   :  { %v22_v5 = vsub.f32 %v15_v1, %v21_v4 }
  0x97   :  { %v23_v6 = vmul.f32 %v22_v5, %v22_v5 }
  0x99   :  { %v24_v7 = vsel %vm16_vm0, %v23_v6, 0.0 }
  0x9a   :  { %25 = vadd.xlane.f32.xlu0 %v24_v7 }
 0x127   :  { %v26_v8 = vpop.xlane.xlu0 %25 }
 0x128   :  { %v27_v9 = vmul.f32 0.03125, %v26_v8 }
 0x12a   :  { %v28_v10 = vadd.f32 1e-05, %v27_v9 }
 0x12c   :  { %54 = vrsqrt.f32 %v28_v10 }
 0x136   :  { %v55_v11 = vpop.eup %54 }
 0x137   :  { %v30_v13 = vmul.f32 %v55_v11, %v22_v5 }
 0x139   :  { %v38_v15 = vmul.f32 %v52_v12, %v30_v13 }
 0x13b   :  { %v46_v16 = vadd.f32 %v53_v14, %v38_v15 }
 0x13d   :  { %47 = vst.msk [vmem:[%s94_s3] sm:$0x3] %vm16_vm0, %v46_v16 }

</bundles_post_ra>
